<compile_context>
chip_gen: v5e
topology: v5e:2x2
jax: 0.10.0
libtpu: 0.0.40
codegen_flags: <defaults>
</compile_context>

<pallas_src>
import functools

import jax
import jax.numpy as jnp
import numpy as np
from jax.experimental import pallas as pl
from jax.experimental.pallas import tpu as pltpu


def _choose_tile_thw(thw):
    """Lane tile for the THW reduction axis.

    Kept <= 2048 so the per-segment (C_feat, TILE) f32 intermediate plus the
    double-buffered bf16 input block stay well inside v7x's 64 MiB VMEM and
    v5e's 16 MiB default scoped limit, while lane extent stays >= 128 (dense
    vst / ~85%+ of HBM roofline).  Falls back to the full extent (always a
    legal block) when THW is not 128-aligned.
    """
    if thw % 128 != 0:
        return thw
    for t in (2048, 1024, 512, 256, 128):
        if thw % t == 0:
            return t
    return thw


def _col_to_row(col, n):
    """(n, 1) -> (1, n) using only broadcast + sublane reduce.

    Guaranteed-lowerable alternative to a (n,1)->(1,n) reshape/transpose
    relayout.  Runs once per batch element; the (n, n) temporary is tiny.
    """
    ri = jax.lax.broadcasted_iota(jnp.int32, (n, n), 0)
    ci = jax.lax.broadcasted_iota(jnp.int32, (n, n), 1)
    diag = jnp.where(ri == ci, col, 0.0)          # diag[i, j] = col[i] iff i==j
    return jnp.sum(diag, axis=0, keepdims=True)   # (1, n), lane-dense


def _tsn3d_kernel(x_ref, w_ref, b_ref, feat_ref, acc_ref, *,
                  num_seg, c_in, c_feat, inv_count, use_mxu):
    """Fused backbone(1x1x1 conv + ReLU) -> ST pool -> segmental consensus.

    x_ref:    (num_seg*C_in, TILE_THW)  bf16, one batch element, THW on lanes
    w_ref:    (C_feat, C_in)            bf16 pointwise conv weight
    b_ref:    (C_feat, 1)               f32 pointwise conv bias
    feat_ref: (1, C_feat)               f32 consensus feature (lane-dense)
    acc_ref:  (C_feat, 1)               f32 resident pooled-sum accumulator
    """
    k = pl.program_id(1)

    @pl.when(k == 0)
    def _init():
        acc_ref[...] = jnp.zeros_like(acc_ref)

    w = w_ref[...]                                   # (C_feat, C_in) bf16
    b = b_ref[...]                                   # (C_feat, 1)   f32

    if not use_mxu:
        # Hoist the f32 weight columns out of the segment loop (VPU path only;
        # upcast first so no bf16 VALU is required on v5e).
        w_f = w.astype(jnp.float32)
        w_cols = [w_f[:, c:c + 1] for c in range(c_in)]

    part = jnp.zeros((c_feat, 1), jnp.float32)
    for s in range(num_seg):                         # static, small trip count
        x_s = x_ref[pl.ds(s * c_in, c_in), :]        # (C_in, TILE) bf16, static slice

        if use_mxu:
            # bf16 x bf16 -> f32 MXU matmul; dominant compute path for
            # realistic C_feat.  (Bias-folding into an extra K column is a
            # possible further micro-opt; kept separate for clarity.)
            h = jnp.dot(w, x_s, preferred_element_type=jnp.float32)
        else:
            # Tiny C_feat: HBM-bound anyway, rank-1 VPU broadcast-FMA avoids
            # MXU fill/drain for a K=C_in matmul.
            x_f = x_s.astype(jnp.float32)
            h = w_cols[0] * x_f[0:1, :]
            for c in range(1, c_in):
                h = h + w_cols[c] * x_f[c:c + 1, :]

        h = jnp.maximum(h + b, 0.0)                  # bias + ReLU (VPU)
        part = part + jnp.sum(h, axis=1, keepdims=True)   # lane reduce (XLU)

    acc_ref[...] += part

    @pl.when(k == pl.num_programs(1) - 1)
    def _finalize():
        # One fused mean over (num_seg * THW) == pool-then-consensus (both are
        # plain unweighted full-extent averages).
        col = acc_ref[...] * inv_count               # (C_feat, 1)
        feat_ref[...] = _col_to_row(col, c_feat)     # (1, C_feat) lane-dense


def tsn3d_pallas_forward(img_group_0, params, *, test=False):
    """img_group_0: (B, num_seg, C_in, T, H, W) float32 (PyTorch NCDHW per clip)."""
    B, num_seg, C_in, T, H, W = img_group_0.shape
    THW = T * H * W
    C_feat = params["w_bb"].shape[0]

    # Contiguity-preserving reshape only (no HBM transpose); stream bf16,
    # accumulate f32 in-kernel.
    x = img_group_0.reshape(B, num_seg * C_in, THW).astype(jnp.bfloat16)
    w = params["w_bb"].astype(jnp.bfloat16)
    b = params["b_bb"].astype(jnp.float32)

    tile_thw = _choose_tile_thw(THW)
    n_k = THW // tile_thw
    # MXU whenever the VALU would saturate (C_feat >= 128) or K is non-trivial.
    use_mxu = (C_feat >= 128) or (C_in > 8)

    kernel = functools.partial(
        _tsn3d_kernel,
        num_seg=num_seg,
        c_in=C_in,
        c_feat=C_feat,
        inv_count=1.0 / float(num_seg * THW),
        use_mxu=use_mxu,
    )

    feat3 = pl.pallas_call(
        kernel,
        out_shape=jax.ShapeDtypeStruct((B, 1, C_feat), jnp.float32),
        grid_spec=pltpu.PrefetchScalarGridSpec(
            num_scalar_prefetch=0,
            grid=(B, n_k),
            in_specs=[
                pl.BlockSpec((pl.Squeezed(), num_seg * C_in, tile_thw),
                             lambda bi, ki: (bi, 0, ki)),
                pl.BlockSpec((C_feat, C_in), lambda bi, ki: (0, 0)),
                pl.BlockSpec((C_feat, 1), lambda bi, ki: (0, 0)),
            ],
            out_specs=pl.BlockSpec((pl.Squeezed(), 1, C_feat),
                                   lambda bi, ki: (bi, 0, 0)),
            scratch_shapes=[pltpu.VMEM((C_feat, 1), jnp.float32)],
        ),
        compiler_params=pltpu.CompilerParams(
            dimension_semantics=("parallel", "arbitrary"),
            # Explicit scoped-VMEM limit: above v5e's 16 MiB default, within
            # v7x's 64 MiB physical budget.
            vmem_limit_bytes=32 * 1024 * 1024,
        ),
    )(x, w, b)

    feat = feat3.reshape(B, C_feat)                  # metadata-only reshape

    if test:
        # forward_test: cls_head on the consensus feature, returned as numpy.
        cls_score = feat @ params["w_cls"] + params["b_cls"]
        return np.asarray(cls_score)

    # forward_train with gt_label=None returns the consensus feature.
    # TODO(synk): cls_head.loss (cross-entropy vs gt_label) not implemented here.
    return feat


def make_params(c_in, c_feat, num_classes, seed=0):
    k = jax.random.PRNGKey(seed)
    k1, k2, k3, k4 = jax.random.split(k, 4)
    return {
        "w_bb": jax.random.normal(k1, (c_feat, c_in), jnp.float32) * 0.1,
        "b_bb": jax.random.normal(k2, (c_feat, 1), jnp.float32) * 0.01,
        "w_cls": jax.random.normal(k3, (c_feat, num_classes), jnp.float32) * 0.1,
        "b_cls": jax.random.normal(k4, (1, num_classes), jnp.float32) * 0.01,
    }


def _reference_forward(img_group_0, params, *, test=False):
    """Plain-JAX reference mirroring TSN3D_bb.forward (two-stage means).

    Uses the same bf16-cast conv inputs with f32 accumulation as the kernel.
    """
    B, S, C, T, H, W = img_group_0.shape
    x = img_group_0.reshape(B, S, C, T * H * W).astype(jnp.bfloat16)
    w = params["w_bb"].astype(jnp.bfloat16)
    # backbone: 1x1x1 conv + ReLU
    h = jnp.einsum("fc,bsct->bsft", w, x,
                   preferred_element_type=jnp.float32)
    h = jnp.maximum(h + params["b_bb"][None, None], 0.0)
    # spatial_temporal_module: avg pool over THW
    pooled = jnp.mean(h, axis=3)                     # (B, S, C_feat)
    # segmental_consensus: avg over segments
    feat = jnp.mean(pooled, axis=1)                  # (B, C_feat)
    if test:
        return feat @ params["w_cls"] + params["b_cls"]
    return feat


def _run_case(B, num_seg, C_in, T, H, W, C_feat, num_classes, seed):
    key = jax.random.PRNGKey(0)
    img_group_0 = jax.random.normal(key, (B, num_seg, C_in, T, H, W),
                                    jnp.float32)
    params = make_params(C_in, C_feat, num_classes, seed=seed)

    # train path (gt_label=None): consensus feature
    feat = tsn3d_pallas_forward(img_group_0, params, test=False)
    feat = jax.block_until_ready(feat)

    # test path: class scores as numpy
    cls_np = tsn3d_pallas_forward(img_group_0, params, test=True)

    ref_feat = _reference_forward(img_group_0, params, test=False)
    ref_cls = _reference_forward(img_group_0, params, test=True)
    np.testing.assert_allclose(np.asarray(feat), np.asarray(ref_feat),
                               rtol=1e-3, atol=1e-3)
    np.testing.assert_allclose(cls_np, np.asarray(ref_cls),
                               rtol=1e-3, atol=1e-3)


if __name__ == "__main__":
    # Case 1: toy shapes -> VPU rank-1 path, single THW tile.
    _run_case(B=2, num_seg=4, C_in=4, T=4, H=8, W=8,
              C_feat=32, num_classes=8, seed=0)

    # Case 2: larger channels -> MXU path, 2 THW tiles (exercises the resident
    # accumulator / pl.when init+finalize across the "arbitrary" grid axis).
    _run_case(B=2, num_seg=3, C_in=16, T=4, H=32, W=32,
              C_feat=128, num_classes=10, seed=1)

    print("KERNEL_OK")
</pallas_src>

<mosaic_0001>
module attributes {stable_mosaic.version = 11 : i64} {
  func.func @_tsn3d_kernel(%arg0: i32, %arg1: i32, %arg2: memref<1x16x256xbf16, #tpu.memory_space<vmem>>, %arg3: memref<32x4xbf16, #tpu.memory_space<vmem>>, %arg4: memref<32x1xf32, #tpu.memory_space<vmem>>, %arg5: memref<1x1x32xf32, #tpu.memory_space<vmem>>, %arg6: memref<32x1xf32, #tpu.memory_space<vmem>>) attributes {dimension_semantics = [#tpu.dimension_semantics<parallel>, #tpu.dimension_semantics<arbitrary>], iteration_bounds = array<i64: 2, 1>, scalar_prefetch = 0 : i64, scratch_operands = 1 : i64, tpu.core_type = #tpu.core_type<tc>, window_params = [{transform_indices = @transform_0, window_bounds = array<i64: 1, 16, 256>}, {pipeline_mode = #tpu.pipeline_mode<synchronous>, transform_indices = @transform_1, window_bounds = array<i64: 32, 4>}, {pipeline_mode = #tpu.pipeline_mode<synchronous>, transform_indices = @transform_2, window_bounds = array<i64: 32, 1>}, {transform_indices = @transform_3, window_bounds = array<i64: 1, 1, 32>}]} {
    %c0_i32 = arith.constant 0 : i32
    %0 = arith.cmpi eq, %arg1, %c0_i32 : i32
    %1 = arith.extui %0 : i1 to i32
    %c0_i32_0 = arith.constant 0 : i32
    %2 = arith.cmpi ne, %1, %c0_i32_0 : i32
    scf.if %2 {
      %cst_27 = arith.constant 0.000000e+00 : f32
      %133 = vector.broadcast %cst_27 : f32 to vector<32x1xf32>
      %c0_28 = arith.constant 0 : index
      %c0_29 = arith.constant 0 : index
      %134 = vector.load %arg6[%c0_28, %c0_29] : memref<32x1xf32, #tpu.memory_space<vmem>>, vector<32x1xf32>
      tpu.vector_store %arg6[%c0_28, %c0_29], %133 {strides = array<i32>} : memref<32x1xf32, #tpu.memory_space<vmem>>, vector<32x1xf32>,
    } else {
    }
    %c0 = arith.constant 0 : index
    %c0_1 = arith.constant 0 : index
    %3 = vector.load %arg3[%c0, %c0_1] : memref<32x4xbf16, #tpu.memory_space<vmem>>, vector<32x4xbf16>
    %c0_2 = arith.constant 0 : index
    %c0_3 = arith.constant 0 : index
    %4 = vector.load %arg4[%c0_2, %c0_3] : memref<32x1xf32, #tpu.memory_space<vmem>>, vector<32x1xf32>
    %5 = arith.extf %3 : vector<32x4xbf16> to vector<32x4xf32>
    %6 = vector.extract_strided_slice %5 {offsets = [0, 0], sizes = [32, 1], strides = [1, 1]} : vector<32x4xf32> to vector<32x1xf32>
    %7 = vector.extract_strided_slice %5 {offsets = [0, 1], sizes = [32, 1], strides = [1, 1]} : vector<32x4xf32> to vector<32x1xf32>
    %8 = vector.extract_strided_slice %5 {offsets = [0, 2], sizes = [32, 1], strides = [1, 1]} : vector<32x4xf32> to vector<32x1xf32>
    %9 = vector.extract_strided_slice %5 {offsets = [0, 3], sizes = [32, 1], strides = [1, 1]} : vector<32x4xf32> to vector<32x1xf32>
    %cst = arith.constant 0.000000e+00 : f32
    %10 = vector.broadcast %cst : f32 to vector<32x1xf32>
    %c0_4 = arith.constant 0 : index
    %c0_5 = arith.constant 0 : index
    %c0_6 = arith.constant 0 : index
    %11 = vector.load %arg2[%c0_4, %c0_5, %c0_6] : memref<1x16x256xbf16, #tpu.memory_space<vmem>>, vector<1x4x256xbf16>
    %12 = vector.shape_cast %11 : vector<1x4x256xbf16> to vector<4x256xbf16>
    %13 = arith.extf %12 : vector<4x256xbf16> to vector<4x256xf32>
    %14 = vector.extract_strided_slice %13 {offsets = [0, 0], sizes = [1, 256], strides = [1, 1]} : vector<4x256xf32> to vector<1x256xf32>
    %15 = vector.broadcast %6 : vector<32x1xf32> to vector<32x256xf32>
    %16 = vector.broadcast %14 : vector<1x256xf32> to vector<32x256xf32>
    %17 = arith.mulf %15, %16 : vector<32x256xf32>
    %18 = vector.extract_strided_slice %13 {offsets = [1, 0], sizes = [1, 256], strides = [1, 1]} : vector<4x256xf32> to vector<1x256xf32>
    %19 = vector.broadcast %7 : vector<32x1xf32> to vector<32x256xf32>
    %20 = vector.broadcast %18 : vector<1x256xf32> to vector<32x256xf32>
    %21 = arith.mulf %19, %20 : vector<32x256xf32>
    %22 = arith.addf %17, %21 : vector<32x256xf32>
    %23 = vector.extract_strided_slice %13 {offsets = [2, 0], sizes = [1, 256], strides = [1, 1]} : vector<4x256xf32> to vector<1x256xf32>
    %24 = vector.broadcast %8 : vector<32x1xf32> to vector<32x256xf32>
    %25 = vector.broadcast %23 : vector<1x256xf32> to vector<32x256xf32>
    %26 = arith.mulf %24, %25 : vector<32x256xf32>
    %27 = arith.addf %22, %26 : vector<32x256xf32>
    %28 = vector.extract_strided_slice %13 {offsets = [3, 0], sizes = [1, 256], strides = [1, 1]} : vector<4x256xf32> to vector<1x256xf32>
    %29 = vector.broadcast %9 : vector<32x1xf32> to vector<32x256xf32>
    %30 = vector.broadcast %28 : vector<1x256xf32> to vector<32x256xf32>
    %31 = arith.mulf %29, %30 : vector<32x256xf32>
    %32 = arith.addf %27, %31 : vector<32x256xf32>
    %33 = vector.broadcast %4 : vector<32x1xf32> to vector<32x256xf32>
    %34 = arith.addf %32, %33 : vector<32x256xf32>
    %cst_7 = arith.constant 0.000000e+00 : f32
    %35 = vector.broadcast %cst_7 : f32 to vector<32x256xf32>
    %36 = arith.maximumf %34, %35 : vector<32x256xf32>
    %cst_8 = arith.constant dense<0.000000e+00> : vector<32xf32>
    %37 = vector.multi_reduction <add>, %36, %cst_8 [1] : vector<32x256xf32> to vector<32xf32>
    %38 = vector.shape_cast %37 : vector<32xf32> to vector<32x1xf32>
    %39 = arith.addf %10, %38 : vector<32x1xf32>
    %c0_9 = arith.constant 0 : index
    %c4 = arith.constant 4 : index
    %c0_10 = arith.constant 0 : index
    %40 = vector.load %arg2[%c0_9, %c4, %c0_10] : memref<1x16x256xbf16, #tpu.memory_space<vmem>>, vector<1x4x256xbf16>
    %41 = vector.shape_cast %40 : vector<1x4x256xbf16> to vector<4x256xbf16>
    %42 = arith.extf %41 : vector<4x256xbf16> to vector<4x256xf32>
    %43 = vector.extract_strided_slice %42 {offsets = [0, 0], sizes = [1, 256], strides = [1, 1]} : vector<4x256xf32> to vector<1x256xf32>
    %44 = vector.broadcast %6 : vector<32x1xf32> to vector<32x256xf32>
    %45 = vector.broadcast %43 : vector<1x256xf32> to vector<32x256xf32>
    %46 = arith.mulf %44, %45 : vector<32x256xf32>
    %47 = vector.extract_strided_slice %42 {offsets = [1, 0], sizes = [1, 256], strides = [1, 1]} : vector<4x256xf32> to vector<1x256xf32>
    %48 = vector.broadcast %7 : vector<32x1xf32> to vector<32x256xf32>
    %49 = vector.broadcast %47 : vector<1x256xf32> to vector<32x256xf32>
    %50 = arith.mulf %48, %49 : vector<32x256xf32>
    %51 = arith.addf %46, %50 : vector<32x256xf32>
    %52 = vector.extract_strided_slice %42 {offsets = [2, 0], sizes = [1, 256], strides = [1, 1]} : vector<4x256xf32> to vector<1x256xf32>
    %53 = vector.broadcast %8 : vector<32x1xf32> to vector<32x256xf32>
    %54 = vector.broadcast %52 : vector<1x256xf32> to vector<32x256xf32>
    %55 = arith.mulf %53, %54 : vector<32x256xf32>
    %56 = arith.addf %51, %55 : vector<32x256xf32>
    %57 = vector.extract_strided_slice %42 {offsets = [3, 0], sizes = [1, 256], strides = [1, 1]} : vector<4x256xf32> to vector<1x256xf32>
    %58 = vector.broadcast %9 : vector<32x1xf32> to vector<32x256xf32>
    %59 = vector.broadcast %57 : vector<1x256xf32> to vector<32x256xf32>
    %60 = arith.mulf %58, %59 : vector<32x256xf32>
    %61 = arith.addf %56, %60 : vector<32x256xf32>
    %62 = vector.broadcast %4 : vector<32x1xf32> to vector<32x256xf32>
    %63 = arith.addf %61, %62 : vector<32x256xf32>
    %cst_11 = arith.constant 0.000000e+00 : f32
    %64 = vector.broadcast %cst_11 : f32 to vector<32x256xf32>
    %65 = arith.maximumf %63, %64 : vector<32x256xf32>
    %cst_12 = arith.constant dense<0.000000e+00> : vector<32xf32>
    %66 = vector.multi_reduction <add>, %65, %cst_12 [1] : vector<32x256xf32> to vector<32xf32>
    %67 = vector.shape_cast %66 : vector<32xf32> to vector<32x1xf32>
    %68 = arith.addf %39, %67 : vector<32x1xf32>
    %c0_13 = arith.constant 0 : index
    %c8 = arith.constant 8 : index
    %c0_14 = arith.constant 0 : index
    %69 = vector.load %arg2[%c0_13, %c8, %c0_14] : memref<1x16x256xbf16, #tpu.memory_space<vmem>>, vector<1x4x256xbf16>
    %70 = vector.shape_cast %69 : vector<1x4x256xbf16> to vector<4x256xbf16>
    %71 = arith.extf %70 : vector<4x256xbf16> to vector<4x256xf32>
    %72 = vector.extract_strided_slice %71 {offsets = [0, 0], sizes = [1, 256], strides = [1, 1]} : vector<4x256xf32> to vector<1x256xf32>
    %73 = vector.broadcast %6 : vector<32x1xf32> to vector<32x256xf32>
    %74 = vector.broadcast %72 : vector<1x256xf32> to vector<32x256xf32>
    %75 = arith.mulf %73, %74 : vector<32x256xf32>
    %76 = vector.extract_strided_slice %71 {offsets = [1, 0], sizes = [1, 256], strides = [1, 1]} : vector<4x256xf32> to vector<1x256xf32>
    %77 = vector.broadcast %7 : vector<32x1xf32> to vector<32x256xf32>
    %78 = vector.broadcast %76 : vector<1x256xf32> to vector<32x256xf32>
    %79 = arith.mulf %77, %78 : vector<32x256xf32>
    %80 = arith.addf %75, %79 : vector<32x256xf32>
    %81 = vector.extract_strided_slice %71 {offsets = [2, 0], sizes = [1, 256], strides = [1, 1]} : vector<4x256xf32> to vector<1x256xf32>
    %82 = vector.broadcast %8 : vector<32x1xf32> to vector<32x256xf32>
    %83 = vector.broadcast %81 : vector<1x256xf32> to vector<32x256xf32>
    %84 = arith.mulf %82, %83 : vector<32x256xf32>
    %85 = arith.addf %80, %84 : vector<32x256xf32>
    %86 = vector.extract_strided_slice %71 {offsets = [3, 0], sizes = [1, 256], strides = [1, 1]} : vector<4x256xf32> to vector<1x256xf32>
    %87 = vector.broadcast %9 : vector<32x1xf32> to vector<32x256xf32>
    %88 = vector.broadcast %86 : vector<1x256xf32> to vector<32x256xf32>
    %89 = arith.mulf %87, %88 : vector<32x256xf32>
    %90 = arith.addf %85, %89 : vector<32x256xf32>
    %91 = vector.broadcast %4 : vector<32x1xf32> to vector<32x256xf32>
    %92 = arith.addf %90, %91 : vector<32x256xf32>
    %cst_15 = arith.constant 0.000000e+00 : f32
    %93 = vector.broadcast %cst_15 : f32 to vector<32x256xf32>
    %94 = arith.maximumf %92, %93 : vector<32x256xf32>
    %cst_16 = arith.constant dense<0.000000e+00> : vector<32xf32>
    %95 = vector.multi_reduction <add>, %94, %cst_16 [1] : vector<32x256xf32> to vector<32xf32>
    %96 = vector.shape_cast %95 : vector<32xf32> to vector<32x1xf32>
    %97 = arith.addf %68, %96 : vector<32x1xf32>
    %c0_17 = arith.constant 0 : index
    %c12 = arith.constant 12 : index
    %c0_18 = arith.constant 0 : index
    %98 = vector.load %arg2[%c0_17, %c12, %c0_18] : memref<1x16x256xbf16, #tpu.memory_space<vmem>>, vector<1x4x256xbf16>
    %99 = vector.shape_cast %98 : vector<1x4x256xbf16> to vector<4x256xbf16>
    %100 = arith.extf %99 : vector<4x256xbf16> to vector<4x256xf32>
    %101 = vector.extract_strided_slice %100 {offsets = [0, 0], sizes = [1, 256], strides = [1, 1]} : vector<4x256xf32> to vector<1x256xf32>
    %102 = vector.broadcast %6 : vector<32x1xf32> to vector<32x256xf32>
    %103 = vector.broadcast %101 : vector<1x256xf32> to vector<32x256xf32>
    %104 = arith.mulf %102, %103 : vector<32x256xf32>
    %105 = vector.extract_strided_slice %100 {offsets = [1, 0], sizes = [1, 256], strides = [1, 1]} : vector<4x256xf32> to vector<1x256xf32>
    %106 = vector.broadcast %7 : vector<32x1xf32> to vector<32x256xf32>
    %107 = vector.broadcast %105 : vector<1x256xf32> to vector<32x256xf32>
    %108 = arith.mulf %106, %107 : vector<32x256xf32>
    %109 = arith.addf %104, %108 : vector<32x256xf32>
    %110 = vector.extract_strided_slice %100 {offsets = [2, 0], sizes = [1, 256], strides = [1, 1]} : vector<4x256xf32> to vector<1x256xf32>
    %111 = vector.broadcast %8 : vector<32x1xf32> to vector<32x256xf32>
    %112 = vector.broadcast %110 : vector<1x256xf32> to vector<32x256xf32>
    %113 = arith.mulf %111, %112 : vector<32x256xf32>
    %114 = arith.addf %109, %113 : vector<32x256xf32>
    %115 = vector.extract_strided_slice %100 {offsets = [3, 0], sizes = [1, 256], strides = [1, 1]} : vector<4x256xf32> to vector<1x256xf32>
    %116 = vector.broadcast %9 : vector<32x1xf32> to vector<32x256xf32>
    %117 = vector.broadcast %115 : vector<1x256xf32> to vector<32x256xf32>
    %118 = arith.mulf %116, %117 : vector<32x256xf32>
    %119 = arith.addf %114, %118 : vector<32x256xf32>
    %120 = vector.broadcast %4 : vector<32x1xf32> to vector<32x256xf32>
    %121 = arith.addf %119, %120 : vector<32x256xf32>
    %cst_19 = arith.constant 0.000000e+00 : f32
    %122 = vector.broadcast %cst_19 : f32 to vector<32x256xf32>
    %123 = arith.maximumf %121, %122 : vector<32x256xf32>
    %cst_20 = arith.constant dense<0.000000e+00> : vector<32xf32>
    %124 = vector.multi_reduction <add>, %123, %cst_20 [1] : vector<32x256xf32> to vector<32xf32>
    %125 = vector.shape_cast %124 : vector<32xf32> to vector<32x1xf32>
    %126 = arith.addf %97, %125 : vector<32x1xf32>
    %c0_21 = arith.constant 0 : index
    %c0_22 = arith.constant 0 : index
    %127 = vector.load %arg6[%c0_21, %c0_22] : memref<32x1xf32, #tpu.memory_space<vmem>>, vector<32x1xf32>
    %128 = arith.addf %127, %126 : vector<32x1xf32>
    %c0_23 = arith.constant 0 : index
    %c0_24 = arith.constant 0 : index
    %129 = vector.load %arg6[%c0_23, %c0_24] : memref<32x1xf32, #tpu.memory_space<vmem>>, vector<32x1xf32>
    tpu.vector_store %arg6[%c0_23, %c0_24], %128 {strides = array<i32>} : memref<32x1xf32, #tpu.memory_space<vmem>>, vector<32x1xf32>,
    %c0_i32_25 = arith.constant 0 : i32
    %130 = arith.cmpi eq, %arg1, %c0_i32_25 : i32
    %131 = arith.extui %130 : i1 to i32
    %c0_i32_26 = arith.constant 0 : i32
    %132 = arith.cmpi ne, %131, %c0_i32_26 : i32
    scf.if %132 {
      %c0_27 = arith.constant 0 : index
      %c0_28 = arith.constant 0 : index
      %133 = vector.load %arg6[%c0_27, %c0_28] : memref<32x1xf32, #tpu.memory_space<vmem>>, vector<32x1xf32>
      %cst_29 = arith.constant 9.765625E-4 : f32
      %134 = vector.broadcast %cst_29 : f32 to vector<32x1xf32>
      %135 = arith.mulf %133, %134 : vector<32x1xf32>
      %136 = tpu.iota {dimensions = array<i32: 0>} : vector<32x32xi32>
      %137 = tpu.iota {dimensions = array<i32: 1>} : vector<32x32xi32>
      %138 = arith.cmpi eq, %136, %137 : vector<32x32xi32>
      %cst_30 = arith.constant 0.000000e+00 : f32
      %139 = vector.shape_cast %135 : vector<32x1xf32> to vector<32x1xf32>
      %140 = vector.broadcast %139 : vector<32x1xf32> to vector<32x32xf32>
      %141 = vector.broadcast %cst_30 : f32 to vector<32x32xf32>
      %142 = arith.select %138, %140, %141 : vector<32x32xi1>, vector<32x32xf32>
      %cst_31 = arith.constant dense<0.000000e+00> : vector<32xf32>
      %143 = vector.multi_reduction <add>, %142, %cst_31 [0] : vector<32x32xf32> to vector<32xf32>
      %144 = vector.shape_cast %143 : vector<32xf32> to vector<1x32xf32>
      %c0_32 = arith.constant 0 : index
      %c0_33 = arith.constant 0 : index
      %c0_34 = arith.constant 0 : index
      %145 = vector.load %arg5[%c0_32, %c0_33, %c0_34] : memref<1x1x32xf32, #tpu.memory_space<vmem>>, vector<1x1x32xf32>
      %146 = vector.shape_cast %145 : vector<1x1x32xf32> to vector<1x32xf32>
      %147 = vector.shape_cast %144 : vector<1x32xf32> to vector<1x1x32xf32>
      tpu.vector_store %arg5[%c0_32, %c0_33, %c0_34], %147 {strides = array<i32>} : memref<1x1x32xf32, #tpu.memory_space<vmem>>, vector<1x1x32xf32>,
    } else {
    }
    return
  }
  func.func @transform_0(%arg0: i32, %arg1: i32) -> (i32, i32, i32) {
    %c0_i32 = arith.constant 0 : i32
    %c0_i32_0 = arith.constant 0 : i32
    return %arg0, %c0_i32, %arg1 : i32, i32, i32
  }
  func.func @transform_1(%arg0: i32, %arg1: i32) -> (i32, i32) {
    %c0_i32 = arith.constant 0 : i32
    %c0_i32_0 = arith.constant 0 : i32
    %c0_i32_1 = arith.constant 0 : i32
    return %c0_i32, %c0_i32_0 : i32, i32
  }
  func.func @transform_2(%arg0: i32, %arg1: i32) -> (i32, i32) {
    %c0_i32 = arith.constant 0 : i32
    %c0_i32_0 = arith.constant 0 : i32
    %c0_i32_1 = arith.constant 0 : i32
    return %c0_i32, %c0_i32_0 : i32, i32
  }
  func.func @transform_3(%arg0: i32, %arg1: i32) -> (i32, i32, i32) {
    %c0_i32 = arith.constant 0 : i32
    %c0_i32_0 = arith.constant 0 : i32
    %c0_i32_1 = arith.constant 0 : i32
    return %arg0, %c0_i32, %c0_i32_0 : i32, i32, i32
  }
}

</mosaic_0001>

<bundles_post_ra>
// kernel: tpu_custom_call.1
= control target key start
LH: loop header
LB: loop body
LE: loop exit
PB: predicated region body
PF: predicated region fallthrough
CT: control target
= control target key end

     0   :  { %8 = vsyncpa [#allocation4], 0  ;;  %s1661_s0 = inlined_call_operand.vmem [shape: bf16[2,16,256], index: 0, kind: input, shape index: {}]   ;;  %s1662_s1 = inlined_call_operand.vmem [shape: bf16[32,4], index: 1, kind: input, shape index: {}]   ;;  %s1663_s2 = inlined_call_operand.vmem [shape: f32[32,1], index: 2, kind: input, shape index: {}]   ;;  %s1664_s3 = inlined_call_operand.hbm [shape: f32[2,1,32], index: 3, kind: output, shape index: {}]  }
   0x1   :  { %10 = vsyncpa [#allocation4 + $0x1], 0  ;;  %s1090_s12 = smov 0   ;;  %s1092_s13 = smov 0  }
   0x2   :  { %s1094_s14 = smov 0   ;;  %s1096_s15 = smov 0  }
   0x3   :  { %s1098_s16 = smov 0   ;;  %s1100_s17 = smov 0  }
   0x4 LB: > { %s858_s18 = sadd.s32 4294967295, %s1063_s17   ;;  %s859_s19 = sadd.s32 4294967294, %s1063_s17   ;;  %s1063_s17 = sphi %s1100_s17, %s16_s17   ;;  %s1059_s16 = sphi %s1098_s16, %s1747_s16   ;;  %s1055_s15 = sphi %s1096_s15, %s1746_s15   ;;  %s1051_s14 = sphi %s1094_s14, %s1745_s14   ;;  %s1047_s13 = sphi %s1092_s13, %s1744_s13   ;;  %s1043_s12 = sphi %s1090_s12, %s1743_s12  }
   0x5   : > { %s28_s20 = sadd.s32 1, %s1059_s16  ;;  %s105_s21 = sadd.s32 1, %s1051_s14 }
   0x6   : > { %p30_p0 = scmp.ge.s32.totalorder %s28_s20, 2  ;;  %p115_p1 = scmp.ne.s32.totalorder %s1051_s14, %s1047_s13 }
   0x7   : > { %p116_p2 = scmp.eq.s32.totalorder %s858_s18, 1  ;;  %p121_p3 = scmp.ne.s32.totalorder %s1047_s13, %s1043_s12 }
   0x8   : > { %s1749_s20 = smov (%p30_p0, %s28_s20), 0  ;;  %p122_p5 = scmp.eq.s32.totalorder %s859_s19, 1 }
   0x9   : > { %p1130_p4 = por %p116_p2, %p115_p1  ;;  %s102_s23 = ssub.s32 %s1059_s16, %s1749_s20 }
   0xa   : > { %p862_p6 = scmp.ge.s32.totalorder %s1063_s17, 1  ;;  %p103_p7 = scmp.eq.s32.totalorder %s102_s23, 0 }
   0xb   : > { %p1137_p8 = por %p122_p5, %p121_p3  ;;  %p159_p9 = scmp.lt.s32.totalorder %s1063_s17, 3 }
   0xc   : > { %s1143_s25 = scalar_select %p103_p7, %s1051_s14, %s105_s21  }
   0xd   : > { %p160_p10 = pnand %p862_p6, %p159_p9 }
   0xf   : > { %163 = sbr.rel (%p160_p10) target bundleno = 491 (0x1eb), region = 32 }
  0x14   : > { %v869_v0 = vld [vmem:[%s1662_s1] sm:$0xff]   ;;  %v1065_v1 = vmov 1   ;;  %v1066_v2 = vmov 0   ;;  %v876_v5 = vld [vmem:[%s1662_s1 + $0x8] sm:$0xff]   ;;  %v1067_v6 = vmov 2   ;;  %v1068_v11 = vmov 3   ;;  %s785_s29 = scalar_lea.hbm %s1664_s3, %s1055_s15 }
  0x15   : > { %948 = vset.pattern.permute.xlu1 %v1065_v1  ;;  %937 = vset.pattern.permute.xlu0 %v1066_v2  ;;  %v870_v3 = vunpack.c.l.bf16 %v869_v0  ;;  %v871_v4 = vunpack.c.h.bf16 %v869_v0  ;;  %v874_v8 = vunpack.c.l.bf16 %v876_v5  ;;  %v875_v9 = vunpack.c.h.bf16 %v876_v5  ;;  %v209_v12 = vld [vmem:[%s1663_s2] sm:$0xff]  ;;  %v210_v13 = vld [vmem:[%s1663_s2 + $0x8] sm:$0xff]  ;;  %v212_v14 = vld [vmem:[%s1663_s2 + $0x18] sm:$0xff]  ;;  %p187_p11 = scmp.lt.s32.totalorder %s1055_s15, 1  ;;  %s184_s26 = sand.u32 1, %s1047_s13  }
  0x16   : > { %959 = vset.pattern.permute.xlu2 %v1067_v6  ;;  %v211_v15 = vld [vmem:[%s1663_s2 + $0x10] sm:$0xff]  ;;  %vm200_vm0 = vcmask 7168   ;;  %vm760_vm4 = vcmask 261120   ;;  %s185_s30 = scalar_lea.vmem [#allocation3], %s184_s26  ;;  %s789_s5 = sshll.u32 %s785_s29, 4  ;;  %vm774_vm6 = vcmask 253952   ;;  %s790_s5 = int_to_ptr.hbm [resolvable:$true] %s789_s5 }
  0x17   : > { %v949_v7 = vpack.i.bf16 %v871_v4, %v870_v3  ;;  %v954_v10 = vpack.i.bf16 %v875_v9, %v874_v8  ;;  %s188_s11 = scalar_select %p187_p11, %s1055_s15, 1 }
  0x18   : > { %s787_s4 = sshll.u32 %s185_s30, 4  ;;  %s777_s6 = scalar_lea.sflag [#allocation4], %s184_s26  ;;  %s788_s4 = int_to_ptr.vmem [resolvable:$true] %s787_s4 }
  0x19   : > { %950 = vperm.xlu1 %948, %v949_v7   ;;  %939 = vperm.xlu0 %937, %v949_v7   ;;  %s867_s18 = sshll.u32 %s188_s11, 4  ;;  %s999_s7 = sshra.s32 %s790_s5, 4  ;;  %s1000_s7 = int_to_ptr.hbm [resolvable:$true] %s999_s7 }
  0x1a   : > { %961 = vperm.xlu2 %959, %v949_v7   ;;  %s194_s23 = scalar_lea.vmem %s1661_s0, %s867_s18  ;;  %s1001_s8 = scalar_lea.hbm %s1000_s7, 1 }
  0x1b   : > { %v404_v16 = vld [vmem:[%s194_s23] sm:$0xcc]  ;;  %v217_v18 = vld [vmem:[%s194_s23] sm:$0x33]  ;;  %v602_v20 = vld [vmem:[%s194_s23 + $0x8] sm:$0xcc]  ;;  %p1002_p12 = scmp.ne.s32.totalorder %s1000_s7, %s1001_s8  ;;  %p1006_p1 = scmp.lt.s32.totalorder %s1000_s7, %s1664_s3 }
  0x1c   : > { %v405_v19 = vunpack.c.l.bf16 %v404_v16  ;;  %v406_v21 = vunpack.c.h.bf16 %v404_v16  ;;  %v218_v23 = vunpack.c.l.bf16 %v217_v18  ;;  %v219_v24 = vunpack.c.h.bf16 %v217_v18  ;;  %v503_v44 = vld [vmem:[%s194_s23 + $0x8] sm:$0x33]  ;;  %s1005_s10 = scalar_lea.hbm %s1664_s3, 2 }
  0x1d   : > { %v1172_v27 = vunpack.c.l.bf16 %v602_v20  ;;  %v1174_v28 = vunpack.c.h.bf16 %v602_v20  ;;  %v1222_v56 = vunpack.c.l.bf16 %v503_v44  ;;  %v1224_v57 = vunpack.c.h.bf16 %v503_v44  ;;  %p1003_p13 = pnand %p1002_p12, %p1130_p4  ;;  %p1007_p2 = scmp.lt.s32.totalorder %s1005_s10, %s1001_s8 }
  0x1e   : > { %v1168_v22 = vperm.slane %v405_v19, 6  ;;  %v1170_v26 = vperm.slane %v406_v21, 6  ;;  %v1176_v29 = vperm.slane %v405_v19, 4  ;;  %v300_v30 = vperm.slane %v218_v23, 2 }
  0x1f   : > { %v301_v31 = vperm.slane %v219_v24, 2  ;;  %v1180_v33 = vperm.slane %v406_v21, 4  ;;  %v1182_v34 = vperm.slane %v405_v19, 5  ;;  %v1184_v35 = vperm.slane %v406_v21, 5  ;;  %p1004_p0 = pneg %p1003_p13  ;;  %p1008_p3 = por %p1007_p2, %p1006_p1 }
  0x20   : > { %1705 = vst [vmem:[#allocation6_spill] sm:$0xff] %v1168_v22  ;;  %v1186_v36 = vperm.slane %v218_v23, 0  ;;  %v1188_v37 = vperm.slane %v219_v24, 0  ;;  %v1190_v38 = vperm.slane %v218_v23, 1  ;;  %v1192_v39 = vperm.slane %v219_v24, 1 }
  0x21   : > { %955 = vperm.xlu1 %948, %v954_v10   ;;  %944 = vperm.xlu0 %937, %v954_v10   ;;  %1706 = vst [vmem:[#allocation7_spill] sm:$0xff] %v1170_v26  ;;  %v1197_v42 = vperm.slane %v1172_v27, 4  ;;  %v1200_v43 = vperm.slane %v1174_v28, 4  ;;  %v1203_v48 = vperm.slane %v1172_v27, 6  ;;  %v1206_v49 = vperm.slane %v1174_v28, 6  ;;  %p1009_p5 = pnand %p1008_p3, %p1004_p0 }
  0x22   : > { %966 = vperm.xlu2 %959, %v954_v10   ;;  %1707 = vst [vmem:[#allocation8_spill] sm:$0xff] %v1176_v29  ;;  %v1226_v58 = vperm.slane %v405_v19, 7  ;;  %v1228_v59 = vperm.slane %v406_v21, 7  ;;  %v1231_v60 = vperm.slane %v1172_v27, 5  ;;  %v1234_v61 = vperm.slane %v1174_v28, 5 }
  0x23   : > { %1709 = vst [vmem:[#allocation10_spill] sm:$0xff] %v1203_v48  ;;  %v1236_v62 = vperm.slane %v218_v23, 3  ;;  %v1238_v63 = vperm.slane %v219_v24, 3  ;;  %v1259_v8 = vperm.slane %v1222_v56, 0  ;;  %v1262_v9 = vperm.slane %v1224_v57, 0 }
  0x24   : > { %1710 = vst [vmem:[#allocation11_spill] sm:$0xff] %v1206_v49 }
  0x25   : > { %1713 = vst [vmem:[#allocation14_spill] sm:$0xff] %v1259_v8 }
  0x26   : > { %1714 = vst [vmem:[#allocation15_spill] sm:$0xff] %v1262_v9 }
  0x29   : > { %976 = vset.pattern.permute.xlu1 %v1068_v11  ;;  %970 = vset.pattern.permute.xlu0 %v1068_v11  ;;  %v1268_v11 = vperm.slane %v1224_v57, 2 }
  0x2a   : > { %978 = vperm.xlu1 %976, %v954_v10   ;;  %972 = vperm.xlu0 %970, %v949_v7   ;;  %v1265_v10 = vperm.slane %v1222_v56, 2 }
  0x2b   : > { %982 = vset.pattern.permute.xlu2 %v1066_v2  ;;  %1716 = vst [vmem:[#allocation17_spill] sm:$0xff] %v1268_v11 }
  0x2c   : > { %354 = vperm.xlu2 %982, %v209_v12   ;;  %1715 = vst [vmem:[#allocation16_spill] sm:$0xff] %v1265_v10 }
  0x32   : > { %983 = vset.pattern.permute.xlu1 %v1066_v2  ;;  %984 = vset.pattern.permute.xlu0 %v1066_v2 }
  0x33   : > { %359 = vperm.xlu1 %983, %v210_v13   ;;  %369 = vperm.xlu0 %984, %v212_v14  }
  0x34   : > { %364 = vperm.xlu2 %982, %v211_v15   ;;  %v1277_v15 = vperm.slane %v1222_v56, 1 }
  0x36   : > { %1718 = vst [vmem:[#allocation19_spill] sm:$0xff] %v1277_v15 }
  0x74   : > { %v962_v17 = vpop.permute.xlu2 %961 }
  0x75   : > { %v963_v25 = vunpack.i.l.bf16 %v962_v17  ;;  %v1178_v32 = vunpack.i.h.bf16 %v962_v17  ;;  %v1282_v17 = vperm.slane %v1224_v57, 1 }
  0x77   : > { %1708 = vst [vmem:[#allocation9_spill] sm:$0xff] %v1178_v32  ;;  %v437_v40 = vmul.f32 %v963_v25, %v1168_v22  ;;  %v438_v41 = vmul.f32 %v963_v25, %v1170_v26  ;;  %v302_v46 = vmul.f32 %v963_v25, %v300_v30  ;;  %v303_v47 = vmul.f32 %v963_v25, %v301_v31 }
  0x78   : > { %v304_v52 = vmul.f32 %v1178_v32, %v300_v30  ;;  %v305_v53 = vmul.f32 %v1178_v32, %v301_v31  ;;  %v1216_v54 = vmul.f32 %v1178_v32, %v1168_v22  ;;  %v1220_v55 = vmul.f32 %v1178_v32, %v1170_v26  ;;  %1720 = vst [vmem:[#allocation21_spill] sm:$0xff] %v1282_v17 }
  0x79   : > { %v1241_v0 = vmul.f32 %v963_v25, %v1203_v48  ;;  %v1244_v1 = vmul.f32 %v963_v25, %v1206_v49  ;;  %v1285_v18 = vmul.f32 %v963_v25, %v1265_v10  ;;  %v1288_v19 = vmul.f32 %v963_v25, %v1268_v11 }
  0x7c   : > { %v967_v45 = vpop.permute.xlu2 %966 }
  0x7d   : > { %v1208_v50 = vunpack.i.h.bf16 %v967_v45  ;;  %v1210_v51 = vunpack.i.l.bf16 %v967_v45 }
  0x7f   : > { %1711 = vst [vmem:[#allocation12_spill] sm:$0xff] %v1208_v50  ;;  %v1247_v2 = vmul.f32 %v1208_v50, %v300_v30  ;;  %v1250_v3 = vmul.f32 %v1208_v50, %v301_v31  ;;  %v1253_v4 = vmul.f32 %v1210_v51, %v300_v30  ;;  %v1256_v5 = vmul.f32 %v1210_v51, %v301_v31 }
  0x80   : > { %1712 = vst [vmem:[#allocation13_spill] sm:$0xff] %v1210_v51 }
  0x8b   : > { %v951_v6 = vpop.permute.xlu1 %950  ;;  %v940_v7 = vpop.permute.xlu0 %939 }
  0x8c   : > { %v1270_v12 = vunpack.i.l.bf16 %v951_v6  ;;  %v1272_v13 = vunpack.i.h.bf16 %v940_v7  ;;  %v1274_v14 = vunpack.i.l.bf16 %v940_v7  ;;  %v1279_v16 = vunpack.i.h.bf16 %v951_v6 }
  0x8e   : > { %1717 = vst [vmem:[#allocation18_spill] sm:$0xff] %v1272_v13  ;;  %v409_v20 = vmul.f32 %v1274_v14, %v1176_v29  ;;  %v410_v21 = vmul.f32 %v1274_v14, %v1180_v33  ;;  %v419_v23 = vmul.f32 %v1270_v12, %v1182_v34  ;;  %v420_v24 = vmul.f32 %v1270_v12, %v1184_v35 }
  0x8f   : > { %1719 = vst [vmem:[#allocation20_spill] sm:$0xff] %v1279_v16  ;;  %v242_v30 = vmul.f32 %v1274_v14, %v1186_v36  ;;  %v243_v31 = vmul.f32 %v1274_v14, %v1188_v37  ;;  %v268_v25 = vmul.f32 %v1270_v12, %v1190_v38  ;;  %v269_v44 = vmul.f32 %v1270_v12, %v1192_v39 }
  0x90   : > { %v427_v45 = vadd.f32 %v419_v23, %v409_v20  ;;  %v428_v6 = vadd.f32 %v420_v24, %v410_v21  ;;  %v244_v7 = vmul.f32 %v1272_v13, %v1186_v36  ;;  %v245_v11 = vmul.f32 %v1272_v13, %v1188_v37 }
  0x91   : > { %v276_v32 = vadd.f32 %v268_v25, %v242_v30  ;;  %v277_v10 = vadd.f32 %v269_v44, %v243_v31  ;;  %v270_v50 = vmul.f32 %v1279_v16, %v1190_v38  ;;  %v271_v49 = vmul.f32 %v1279_v16, %v1192_v39 }
  0x92   : > { %v1314_v48 = vadd.f32 %v437_v40, %v427_v45  ;;  %v1316_v26 = vadd.f32 %v438_v41, %v428_v6  ;;  %v411_v20 = vmul.f32 %v1272_v13, %v1176_v29  ;;  %v412_v21 = vmul.f32 %v1272_v13, %v1180_v33 }
  0x93   : > { %v956_v23 = vpop.permute.xlu1 %955  ;;  %v945_v24 = vpop.permute.xlu0 %944  ;;  %v310_v30 = vadd.f32 %v302_v46, %v276_v32  ;;  %v311_v31 = vadd.f32 %v303_v47, %v277_v10  ;;  %v278_v25 = vadd.f32 %v270_v50, %v244_v7  ;;  %v279_v44 = vadd.f32 %v271_v49, %v245_v11 }
  0x94   : > { %v1322_v51 = vunpack.i.h.bf16 %v956_v23  ;;  %v1324_v22 = vunpack.i.l.bf16 %v956_v23  ;;  %v1326_v40 = vunpack.i.h.bf16 %v945_v24  ;;  %v1328_v41 = vunpack.i.l.bf16 %v945_v24 }
  0x95   : > { %v312_v45 = vadd.f32 %v304_v52, %v278_v25  ;;  %v313_v6 = vadd.f32 %v305_v53, %v279_v44  ;;  %v421_v29 = vmul.f32 %v1279_v16, %v1182_v34  ;;  %v422_v13 = vmul.f32 %v1279_v16, %v1184_v35 }
  0x96   : > { %1721 = vst [vmem:[#allocation22_spill] sm:$0xff] %v1322_v51  ;;  %v248_v32 = vmul.f32 %v1326_v40, %v1186_v36  ;;  %v249_v46 = vmul.f32 %v1326_v40, %v1188_v37  ;;  %v274_v47 = vmul.f32 %v1322_v51, %v1190_v38  ;;  %v275_v49 = vmul.f32 %v1322_v51, %v1192_v39 }
  0x97   : > { %1722 = vst [vmem:[#allocation23_spill] sm:$0xff] %v1326_v40  ;;  %v246_v50 = vmul.f32 %v1328_v41, %v1186_v36  ;;  %v247_v52 = vmul.f32 %v1328_v41, %v1188_v37  ;;  %v272_v53 = vmul.f32 %v1324_v22, %v1190_v38  ;;  %v273_v10 = vmul.f32 %v1324_v22, %v1192_v39 }
  0x98   : > { %v282_v11 = vadd.f32 %v274_v47, %v248_v32  ;;  %v283_v7 = vadd.f32 %v275_v49, %v249_v46  ;;  %v429_v23 = vadd.f32 %v421_v29, %v411_v20  ;;  %v430_v24 = vadd.f32 %v422_v13, %v412_v21  ;;  %v1362_v29 = vpop.permute.xlu2 %354 }
  0x99   : > { %v280_v25 = vadd.f32 %v272_v53, %v246_v50  ;;  %v281_v44 = vadd.f32 %v273_v10, %v247_v52  ;;  %v607_v16 = vmul.f32 %v1274_v14, %v1197_v42  ;;  %v608_v36 = vmul.f32 %v1274_v14, %v1200_v43 }
  0x9a   : > { %v316_v37 = vadd.f32 %v1247_v2, %v282_v11  ;;  %v317_v51 = vadd.f32 %v1250_v3, %v283_v7  ;;  %v1357_v38 = vadd.f32 %v1216_v54, %v429_v23  ;;  %v1360_v39 = vadd.f32 %v1220_v55, %v430_v24 }
  0x9b   : > { %v314_v13 = vadd.f32 %v1253_v4, %v280_v25  ;;  %v315_v20 = vadd.f32 %v1256_v5, %v281_v44  ;;  %v617_v21 = vmul.f32 %v1270_v12, %v1231_v60  ;;  %v618_v2 = vmul.f32 %v1270_v12, %v1234_v61 }
  0x9c   : > { %v979_v32 = vpop.permute.xlu1 %978  ;;  %v973_v3 = vpop.permute.xlu0 %972  ;;  %v1371_v54 = vperm.slane %v1172_v27, 7  ;;  %v1374_v55 = vperm.slane %v1174_v28, 7  ;;  %v1378_v46 = vmul.f32 %v1274_v14, %v1259_v8  ;;  %v1382_v4 = vmul.f32 %v1274_v14, %v1262_v9 }
  0x9d   : > { %v1384_v5 = vunpack.i.h.bf16 %v979_v32  ;;  %v1386_v47 = vunpack.i.l.bf16 %v979_v32  ;;  %v1388_v49 = vunpack.i.h.bf16 %v973_v3  ;;  %v1390_v50 = vunpack.i.l.bf16 %v973_v3 }
  0x9e   : > { %v625_v27 = vadd.f32 %v617_v21, %v607_v16  ;;  %v626_v52 = vadd.f32 %v618_v2, %v608_v36  ;;  %v1394_v28 = vmul.f32 %v1270_v12, %v1277_v15  ;;  %v1398_v53 = vmul.f32 %v1270_v12, %v1282_v17 }
  0x9f   : > { %1723 = vst [vmem:[#allocation24_spill] sm:$0xff] %v1384_v5  ;;  %v455_v14 = vmul.f32 %v1390_v50, %v1226_v58  ;;  %v456_v10 = vmul.f32 %v1390_v50, %v1228_v59  ;;  %v336_v11 = vmul.f32 %v1390_v50, %v1236_v62  ;;  %v337_v16 = vmul.f32 %v1390_v50, %v1238_v63 }
  0xa0   : > { %v338_v7 = vmul.f32 %v1388_v49, %v1236_v62  ;;  %v339_v23 = vmul.f32 %v1388_v49, %v1238_v63  ;;  %v342_v12 = vmul.f32 %v1384_v5, %v1236_v62  ;;  %v343_v24 = vmul.f32 %v1384_v5, %v1238_v63 }
  0xa1   : > { %v463_v25 = vadd.f32 %v455_v14, %v1314_v48  ;;  %v464_v44 = vadd.f32 %v456_v10, %v1316_v26  ;;  %v344_v36 = vadd.f32 %v336_v11, %v310_v30  ;;  %v345_v21 = vadd.f32 %v337_v16, %v311_v31  ;;  %v1434_v10 = vpop.permute.xlu2 %364 }
  0xa2   : > { %v346_v2 = vadd.f32 %v338_v7, %v312_v45  ;;  %v347_v32 = vadd.f32 %v339_v23, %v313_v6  ;;  %v350_v3 = vadd.f32 %v342_v12, %v316_v37  ;;  %v351_v17 = vadd.f32 %v343_v24, %v317_v51 }
  0xa3   : > { %v471_v15 = vadd.f32 %v463_v25, %v1362_v29  ;;  %v472_v9 = vadd.f32 %v464_v44, %v1362_v29  ;;  %v372_v8 = vadd.f32 %v1362_v29, %v344_v36  ;;  %v373_v40 = vadd.f32 %v1362_v29, %v345_v21 }
  0xa4   : > { %v340_v5 = vmul.f32 %v1386_v47, %v1236_v62  ;;  %v341_v26 = vmul.f32 %v1386_v47, %v1238_v63  ;;  %v457_v48 = vmul.f32 %v1388_v49, %v1226_v58  ;;  %v458_v51 = vmul.f32 %v1388_v49, %v1228_v59 }
  0xa5   : > { %v1430_v30 = vpop.permute.xlu1 %359  ;;  %v1432_v31 = vpop.permute.xlu0 %369  ;;  %v479_v45 = vmax.f32 %v471_v15, 0.0  ;;  %v480_v6 = vmax.f32 %v472_v9, 0.0  ;;  %v380_v37 = vmax.f32 %v372_v8, 0.0  ;;  %v381_v14 = vmax.f32 %v373_v40, 0.0 }
  0xa6   : > { %v374_v62 = vadd.f32 %v1430_v30, %v346_v2  ;;  %v375_v63 = vadd.f32 %v1430_v30, %v347_v32  ;;  %v378_v11 = vadd.f32 %v1432_v31, %v350_v3  ;;  %v379_v16 = vadd.f32 %v1432_v31, %v351_v17 }
  0xa7   : > { %v487_v7 = vadd.f32 %v480_v6, %v479_v45  ;;  %v388_v23 = vadd.f32 %v381_v14, %v380_v37  ;;  %v348_v12 = vadd.f32 %v340_v5, %v314_v13  ;;  %v349_v24 = vadd.f32 %v341_v26, %v315_v20 }
  0xa8   : > { %v382_v25 = vmax.f32 %v374_v62, 0.0  ;;  %v383_v44 = vmax.f32 %v375_v63, 0.0  ;;  %v386_v15 = vmax.f32 %v378_v11, 0.0  ;;  %v387_v9 = vmax.f32 %v379_v16, 0.0 }
  0xa9   : > { %488 = vadd.xlane.f32.xlu0 %v487_v7  ;;  %389 = vadd.xlane.f32.xlu1 %v388_v23  ;;  %v376_v8 = vadd.f32 %v1434_v10, %v348_v12  ;;  %v377_v40 = vadd.f32 %v1434_v10, %v349_v24  ;;  %v465_v36 = vadd.f32 %v457_v48, %v1357_v38  ;;  %v1444_v21 = vperm.slane %v1222_v56, 3  ;;  %v1725_v12 = vld [vmem:[#allocation6_spill] sm:$0xff]  ;;  %v1726_v24 = vld [vmem:[#allocation13_spill] sm:$0xff] }
  0xaa   : > { %v391_v17 = vadd.f32 %v383_v44, %v382_v25  ;;  %v397_v2 = vadd.f32 %v387_v9, %v386_v15  ;;  %v466_v13 = vadd.f32 %v458_v51, %v1360_v39  ;;  %v643_v20 = vadd.f32 %v1241_v0, %v625_v27 }
  0xab   : > { %v384_v5 = vmax.f32 %v376_v8, 0.0  ;;  %v385_v32 = vmax.f32 %v377_v40, 0.0  ;;  %v473_v3 = vadd.f32 %v465_v36, %v1430_v30  ;;  %v644_v26 = vadd.f32 %v1244_v1, %v626_v52  ;;  %v1727_v8 = vld [vmem:[#allocation7_spill] sm:$0xff] }
  0xac   : > { %392 = vadd.xlane.f32.xlu2 %v391_v17  ;;  %v474_v45 = vadd.f32 %v466_v13, %v1430_v30  ;;  %v653_v38 = vmul.f32 %v1390_v50, %v1371_v54  ;;  %v654_v56 = vmul.f32 %v1390_v50, %v1374_v55  ;;  %v526_v39 = vadd.f32 %v1394_v28, %v1378_v46  ;;  %v1724_v28 = vld [vmem:[#allocation8_spill] sm:$0xff] }
  0xad   : > { %v394_v48 = vadd.f32 %v385_v32, %v384_v5  ;;  %v481_v0 = vmax.f32 %v473_v3, 0.0  ;;  %v527_v27 = vadd.f32 %v1398_v53, %v1382_v4  ;;  %v1460_v51 = vperm.slane %v1224_v57, 3 }
  0xae   : > { %v482_v1 = vmax.f32 %v474_v45, 0.0  ;;  %v661_v52 = vadd.f32 %v653_v38, %v643_v20  ;;  %v662_v6 = vadd.f32 %v654_v56, %v644_v26  ;;  %v544_v37 = vadd.f32 %v1285_v18, %v526_v39 }
  0xaf   : > { %v545_v14 = vadd.f32 %v1288_v19, %v527_v27  ;;  %v554_v62 = vmul.f32 %v1390_v50, %v1444_v21  ;;  %v555_v46 = vmul.f32 %v1390_v50, %v1460_v51  ;;  %v413_v63 = vmul.f32 %v1328_v41, %v1724_v28  ;;  %v1729_v27 = vld [vmem:[#allocation11_spill] sm:$0xff] }
  0xb0   : > { %v490_v4 = vadd.f32 %v482_v1, %v481_v0  ;;  %v669_v57 = vadd.f32 %v661_v52, %v1362_v29  ;;  %v670_v53 = vadd.f32 %v662_v6, %v1362_v29  ;;  %v414_v11 = vmul.f32 %v1328_v41, %v1180_v33 }
  0xb1   : > { %398 = vadd.xlane.f32.xlu0 %v397_v2  ;;  %395 = vadd.xlane.f32.xlu1 %v394_v48  ;;  %v562_v18 = vadd.f32 %v554_v62, %v544_v37  ;;  %v563_v19 = vadd.f32 %v555_v46, %v545_v14  ;;  %v423_v16 = vmul.f32 %v1324_v22, %v1182_v34  ;;  %v1728_v48 = vld [vmem:[#allocation10_spill] sm:$0xff] }
  0xb2   : > { %v677_v7 = vmax.f32 %v669_v57, 0.0  ;;  %v678_v50 = vmax.f32 %v670_v53, 0.0  ;;  %v424_v23 = vmul.f32 %v1324_v22, %v1184_v35  ;;  %v441_v25 = vmul.f32 %v1726_v24, %v1725_v12 }
  0xb3   : > { %v570_v44 = vadd.f32 %v562_v18, %v1362_v29  ;;  %v571_v15 = vadd.f32 %v563_v19, %v1362_v29  ;;  %v431_v9 = vadd.f32 %v423_v16, %v413_v63  ;;  %v442_v40 = vmul.f32 %v1726_v24, %v1727_v8  ;;  %v1730_v63 = vld [vmem:[#allocation23_spill] sm:$0xff]  ;;  %v1731_v16 = vld [vmem:[#allocation22_spill] sm:$0xff] }
  0xb4   : > { %491 = vadd.xlane.f32.xlu2 %v490_v4  ;;  %v685_v36 = vadd.f32 %v678_v50, %v677_v7  ;;  %v432_v17 = vadd.f32 %v424_v23, %v414_v11  ;;  %v459_v2 = vmul.f32 %v1386_v47, %v1226_v58  ;;  %v460_v13 = vmul.f32 %v1386_v47, %v1228_v59  ;;  %v1732_v23 = vld [vmem:[#allocation12_spill] sm:$0xff] }
  0xb5   : > { %v578_v20 = vmax.f32 %v570_v44, 0.0  ;;  %v579_v5 = vmax.f32 %v571_v15, 0.0  ;;  %v449_v32 = vadd.f32 %v441_v25, %v431_v9  ;;  %v611_v3 = vmul.f32 %v1328_v41, %v1197_v42 }
  0xb6   : > { %v450_v29 = vadd.f32 %v442_v40, %v432_v17  ;;  %v612_v26 = vmul.f32 %v1328_v41, %v1200_v43  ;;  %v621_v45 = vmul.f32 %v1324_v22, %v1231_v60  ;;  %v622_v38 = vmul.f32 %v1324_v22, %v1234_v61 }
  0xb7   : > { %v586_v56 = vadd.f32 %v579_v5, %v578_v20  ;;  %v467_v39 = vadd.f32 %v459_v2, %v449_v32  ;;  %v639_v0 = vmul.f32 %v1726_v24, %v1728_v48  ;;  %v640_v1 = vmul.f32 %v1726_v24, %v1729_v27  ;;  %v1735_v20 = vld [vmem:[#allocation18_spill] sm:$0xff] }
  0xb8   : > { %v468_v52 = vadd.f32 %v460_v13, %v450_v29  ;;  %v629_v6 = vadd.f32 %v621_v45, %v611_v3  ;;  %v630_v37 = vadd.f32 %v622_v38, %v612_v26  ;;  %v657_v14 = vmul.f32 %v1386_v47, %v1371_v54  ;;  %v1736_v29 = vld [vmem:[#allocation15_spill] sm:$0xff]  ;;  %v1738_v45 = vld [vmem:[#allocation20_spill] sm:$0xff] }
  0xb9   : > { %686 = vadd.xlane.f32.xlu0 %v685_v36  ;;  %587 = vadd.xlane.f32.xlu1 %v586_v56  ;;  %v475_v62 = vadd.f32 %v467_v39, %v1434_v10  ;;  %v658_v46 = vmul.f32 %v1386_v47, %v1374_v55  ;;  %v415_v4 = vmul.f32 %v1730_v63, %v1724_v28  ;;  %v1737_v26 = vld [vmem:[#allocation19_spill] sm:$0xff] }
  0xba   : > { %v476_v57 = vadd.f32 %v468_v52, %v1434_v10  ;;  %v647_v53 = vadd.f32 %v639_v0, %v629_v6  ;;  %v648_v11 = vadd.f32 %v640_v1, %v630_v37  ;;  %v416_v18 = vmul.f32 %v1730_v63, %v1180_v33  ;;  %v1733_v33 = vld [vmem:[#allocation24_spill] sm:$0xff]  ;;  %v1741_v1 = vld [vmem:[#allocation9_spill] sm:$0xff] }
  0xbb   : > { %v483_v19 = vmax.f32 %v475_v62, 0.0  ;;  %v425_v7 = vmul.f32 %v1731_v16, %v1182_v34  ;;  %v426_v50 = vmul.f32 %v1731_v16, %v1184_v35  ;;  %v443_v25 = vmul.f32 %v1732_v23, %v1725_v12  ;;  %v1734_v12 = vld [vmem:[#allocation14_spill] sm:$0xff]  ;;  %v1740_v0 = vld [vmem:[#allocation16_spill] sm:$0xff]  ;;  %v1742_v62 = vld [vmem:[#allocation17_spill] sm:$0xff] }
  0xbc   : > { %v484_v44 = vmax.f32 %v476_v57, 0.0  ;;  %v665_v15 = vadd.f32 %v657_v14, %v647_v53  ;;  %v666_v28 = vadd.f32 %v658_v46, %v648_v11  ;;  %v444_v9 = vmul.f32 %v1732_v23, %v1727_v8 }
  0xbd   : > { %v433_v40 = vadd.f32 %v425_v7, %v415_v4  ;;  %v434_v36 = vadd.f32 %v426_v50, %v416_v18  ;;  %v461_v17 = vmul.f32 %v1733_v33, %v1226_v58  ;;  %v462_v34 = vmul.f32 %v1733_v33, %v1228_v59  ;;  %v1739_v59 = vld [vmem:[#allocation21_spill] sm:$0xff] }
  0xbe   : > { %v493_v2 = vadd.f32 %v484_v44, %v483_v19  ;;  %v673_v35 = vadd.f32 %v665_v15, %v1434_v10  ;;  %v674_v13 = vadd.f32 %v666_v28, %v1434_v10  ;;  %v510_v5 = vmul.f32 %v1735_v20, %v1734_v12 }
  0xbf   : > { %v451_v32 = vadd.f32 %v443_v25, %v433_v40  ;;  %v452_v3 = vadd.f32 %v444_v9, %v434_v36  ;;  %v511_v8 = vmul.f32 %v1735_v20, %v1736_v29  ;;  %v520_v38 = vmul.f32 %v1738_v45, %v1737_v26 }
  0xc0   : > { %494 = vadd.xlane.f32.xlu2 %v493_v2  ;;  %v681_v58 = vmax.f32 %v673_v35, 0.0  ;;  %v682_v56 = vmax.f32 %v674_v13, 0.0  ;;  %v521_v39 = vmul.f32 %v1738_v45, %v1739_v59  ;;  %v538_v52 = vmul.f32 %v1741_v1, %v1740_v0 }
  0xc1   : > { %v469_v6 = vadd.f32 %v461_v17, %v451_v32  ;;  %v470_v37 = vadd.f32 %v462_v34, %v452_v3  ;;  %v528_v14 = vadd.f32 %v520_v38, %v510_v5  ;;  %v539_v46 = vmul.f32 %v1741_v1, %v1742_v62 }
  0xc2   : > { %v691_v4 = vadd.f32 %v682_v56, %v681_v58  ;;  %v529_v57 = vadd.f32 %v521_v39, %v511_v8  ;;  %v556_v53 = vmul.f32 %v1388_v49, %v1444_v21  ;;  %v557_v11 = vmul.f32 %v1388_v49, %v1460_v51 }
  0xc3   : > { %v477_v18 = vadd.f32 %v469_v6, %v1432_v31  ;;  %v478_v19 = vadd.f32 %v470_v37, %v1432_v31  ;;  %v546_v7 = vadd.f32 %v538_v52, %v528_v14  ;;  %v609_v50 = vmul.f32 %v1735_v20, %v1197_v42 }
  0xc4   : > { %692 = vadd.xlane.f32.xlu0 %v691_v4  ;;  %v547_v25 = vadd.f32 %v539_v46, %v529_v57  ;;  %v610_v44 = vmul.f32 %v1735_v20, %v1200_v43  ;;  %v619_v15 = vmul.f32 %v1738_v45, %v1231_v60  ;;  %v620_v28 = vmul.f32 %v1738_v45, %v1234_v61 }
  0xc5   : > { %v485_v9 = vmax.f32 %v477_v18, 0.0  ;;  %v486_v40 = vmax.f32 %v478_v19, 0.0  ;;  %v564_v36 = vadd.f32 %v556_v53, %v546_v7  ;;  %v637_v17 = vmul.f32 %v1741_v1, %v1728_v48 }
  0xc6   : > { %v565_v34 = vadd.f32 %v557_v11, %v547_v25  ;;  %v627_v2 = vadd.f32 %v619_v15, %v609_v50  ;;  %v628_v35 = vadd.f32 %v620_v28, %v610_v44  ;;  %v638_v13 = vmul.f32 %v1741_v1, %v1729_v27 }
  0xc7   : > { %v496_v5 = vadd.f32 %v486_v40, %v485_v9  ;;  %v572_v20 = vadd.f32 %v564_v36, %v1430_v30  ;;  %v655_v32 = vmul.f32 %v1388_v49, %v1371_v54  ;;  %v656_v3 = vmul.f32 %v1388_v49, %v1374_v55 }
  0xc8   : > { %v573_v8 = vadd.f32 %v565_v34, %v1430_v30  ;;  %v645_v45 = vadd.f32 %v637_v17, %v627_v2  ;;  %v646_v38 = vadd.f32 %v638_v13, %v628_v35  ;;  %v512_v58 = vmul.f32 %v1328_v41, %v1734_v12 }
  0xc9   : > { %497 = vadd.xlane.f32.xlu1 %v496_v5  ;;  %v580_v56 = vmax.f32 %v572_v20, 0.0  ;;  %v513_v39 = vmul.f32 %v1328_v41, %v1736_v29  ;;  %v522_v1 = vmul.f32 %v1324_v22, %v1737_v26  ;;  %v523_v52 = vmul.f32 %v1324_v22, %v1739_v59 }
  0xca   : > { %v581_v6 = vmax.f32 %v573_v8, 0.0  ;;  %v663_v49 = vadd.f32 %v655_v32, %v645_v45  ;;  %v664_v37 = vadd.f32 %v656_v3, %v646_v38  ;;  %v540_v14 = vmul.f32 %v1726_v24, %v1740_v0 }
  0xcb   : > { %v530_v46 = vadd.f32 %v522_v1, %v512_v58  ;;  %v531_v4 = vadd.f32 %v523_v52, %v513_v39  ;;  %v541_v57 = vmul.f32 %v1726_v24, %v1742_v62  ;;  %v558_v41 = vmul.f32 %v1386_v47, %v1444_v21 }
  0xcc   : > { %v589_v53 = vadd.f32 %v581_v6, %v580_v56  ;;  %v671_v11 = vadd.f32 %v663_v49, %v1430_v30  ;;  %v672_v18 = vadd.f32 %v664_v37, %v1430_v30  ;;  %v559_v22 = vmul.f32 %v1386_v47, %v1460_v51 }
  0xcd   : > { %v548_v19 = vadd.f32 %v540_v14, %v530_v46  ;;  %v549_v7 = vadd.f32 %v541_v57, %v531_v4  ;;  %v613_v50 = vmul.f32 %v1730_v63, %v1197_v42  ;;  %v614_v25 = vmul.f32 %v1730_v63, %v1200_v43 }
  0xce   : > { %590 = vadd.xlane.f32.xlu2 %v589_v53  ;;  %v679_v24 = vmax.f32 %v671_v11, 0.0  ;;  %v680_v44 = vmax.f32 %v672_v18, 0.0  ;;  %v623_v15 = vmul.f32 %v1731_v16, %v1231_v60  ;;  %v624_v30 = vmul.f32 %v1731_v16, %v1234_v61 }
  0xcf   : > { %v566_v28 = vadd.f32 %v558_v41, %v548_v19  ;;  %v567_v9 = vadd.f32 %v559_v22, %v549_v7  ;;  %v641_v47 = vmul.f32 %v1732_v23, %v1728_v48  ;;  %v642_v42 = vmul.f32 %v1732_v23, %v1729_v27 }
  0xd0   : > { %v688_v40 = vadd.f32 %v680_v44, %v679_v24  ;;  %v631_v36 = vadd.f32 %v623_v15, %v613_v50  ;;  %v632_v43 = vadd.f32 %v624_v30, %v614_v25  ;;  %v659_v17 = vmul.f32 %v1733_v33, %v1371_v54 }
  0xd1   : > { %v574_v34 = vadd.f32 %v566_v28, %v1434_v10  ;;  %v575_v60 = vadd.f32 %v567_v9, %v1434_v10  ;;  %v660_v61 = vmul.f32 %v1733_v33, %v1374_v55  ;;  %v514_v2 = vmul.f32 %v1730_v63, %v1734_v12 }
  0xd2   : > { %689 = vadd.xlane.f32.xlu1 %v688_v40  ;;  %v649_v48 = vadd.f32 %v641_v47, %v631_v36  ;;  %v650_v35 = vadd.f32 %v642_v42, %v632_v43  ;;  %v515_v27 = vmul.f32 %v1730_v63, %v1736_v29  ;;  %v524_v13 = vmul.f32 %v1731_v16, %v1737_v26 }
  0xd3   : > { %v582_v54 = vmax.f32 %v574_v34, 0.0  ;;  %v583_v5 = vmax.f32 %v575_v60, 0.0  ;;  %v525_v10 = vmul.f32 %v1731_v16, %v1739_v59  ;;  %v542_v55 = vmul.f32 %v1732_v23, %v1740_v0 }
  0xd4   : > { %v667_v20 = vadd.f32 %v659_v17, %v649_v48  ;;  %v668_v32 = vadd.f32 %v660_v61, %v650_v35  ;;  %v532_v12 = vadd.f32 %v524_v13, %v514_v2  ;;  %v543_v3 = vmul.f32 %v1732_v23, %v1742_v62 }
  0xd5   : > { %v592_v8 = vadd.f32 %v583_v5, %v582_v54  ;;  %v533_v45 = vadd.f32 %v525_v10, %v515_v27  ;;  %v560_v63 = vmul.f32 %v1733_v33, %v1444_v21  ;;  %v561_v29 = vmul.f32 %v1733_v33, %v1460_v51 }
  0xd6   : > { %v675_v26 = vadd.f32 %v667_v20, %v1432_v31  ;;  %v676_v16 = vadd.f32 %v668_v32, %v1432_v31  ;;  %v550_v59 = vadd.f32 %v542_v55, %v532_v12  ;;  %v1069_v33 = vmov 0.0  }
  0xd7   : > { %593 = vadd.xlane.f32.xlu2 %v592_v8  ;;  %v551_v0 = vadd.f32 %v543_v3, %v533_v45  ;;  %201 = vst.msk [vmem:[#allocation2] sm:$0xff] %vm200_vm0, %v1069_v33  ;;  %v725_v3 = vlaneseq }
  0xd8   : > { %v683_v38 = vmax.f32 %v675_v26, 0.0  ;;  %v684_v58 = vmax.f32 %v676_v16, 0.0  ;;  %v568_v56 = vadd.f32 %v560_v63, %v550_v59  ;;  %202 = vst.msk [vmem:[#allocation2 + $0x8] sm:$0xff] %vm200_vm0, %v1069_v33 }
  0xd9   : > { %v569_v39 = vadd.f32 %v561_v29, %v551_v0  ;;  %203 = vst.msk [vmem:[#allocation2 + $0x10] sm:$0xff] %vm200_vm0, %v1069_v33  ;;  %v726_v8 = vshrl.u32 %v725_v3, 7  ;;  %v731_v63 = vand.u32 127, %v725_v3 }
  0xda   : > { %v694_v23 = vadd.f32 %v684_v58, %v683_v38  ;;  %v576_v62 = vadd.f32 %v568_v56, %v1432_v31  ;;  %204 = vst.msk [vmem:[#allocation2 + $0x18] sm:$0xff] %vm200_vm0, %v1069_v33 }
  0xdb   : > { %v577_v1 = vadd.f32 %v569_v39, %v1432_v31  ;;  %v727_v45 = vadd.s32 8, %v726_v8  ;;  %v728_v29 = vadd.s32 16, %v726_v8  ;;  %vm732_vm2 = vcmp.eq.s32.totalorder %v726_v8, %v731_v63 }
  0xdc   : > { %695 = vadd.xlane.f32.xlu1 %v694_v23  ;;  %v584_v21 = vmax.f32 %v576_v62, 0.0  ;;  %v729_v38 = vadd.s32 24, %v726_v8 }
  0xdd   : > { %v585_v52 = vmax.f32 %v577_v1, 0.0  ;;  %vm733_vm1 = vcmp.eq.s32.totalorder %v727_v45, %v731_v63  ;;  %vm734_vm3 = vcmp.eq.s32.totalorder %v728_v29, %v731_v63 }
  0xde   : > { %v701_v11 = vld [vmem:[#allocation2] sm:$0xff]  ;;  %vm735_vm5 = vcmp.eq.s32.totalorder %v729_v38, %v731_v63 }
  0xdf   : > { %v595_v51 = vadd.f32 %v585_v52, %v584_v21  ;;  %v702_v30 = vld [vmem:[#allocation2 + $0x8] sm:$0xff] }
  0xe0   : > { %v703_v17 = vld [vmem:[#allocation2 + $0x10] sm:$0xff] }
  0xe1   : > { %596 = vadd.xlane.f32.xlu2 %v595_v51  ;;  %v704_v54 = vld [vmem:[#allocation2 + $0x18] sm:$0xff] }
 0x11c   : > { %v489_v6 = vpop.xlane.xlu0 %488  ;;  %v390_v49 = vpop.xlane.xlu1 %389 }
 0x11d   : > { %v499_v46 = vadd.f32 %v489_v6, %v390_v49 }
 0x11f   : > { %v393_v37 = vpop.xlane.xlu2 %392 }
 0x124   : > { %v399_v14 = vpop.xlane.xlu0 %398  ;;  %v396_v31 = vpop.xlane.xlu1 %395 }
 0x127   : > { %v492_v57 = vpop.xlane.xlu2 %491 }
 0x128   : > { %v500_v44 = vadd.f32 %v492_v57, %v393_v37 }
 0x12c   : > { %v588_v4 = vpop.xlane.xlu1 %587  ;;  %v687_v53 = vpop.xlane.xlu0 %686 }
 0x12d   : > { %v598_v41 = vadd.f32 %v588_v4, %v499_v46 }
 0x12f   : > { %v697_v18 = vadd.f32 %v687_v53, %v598_v41 }
 0x131   : > { %v705_v22 = vadd.f32 %v701_v11, %v697_v18 }
 0x133   : > { %710 = vst.msk [vmem:[#allocation2] sm:$0xff] %vm200_vm0, %v705_v22  ;;  %v495_v19 = vpop.xlane.xlu2 %494 }
 0x134   : > { %v501_v42 = vadd.f32 %v495_v19, %v396_v31 }
 0x137   : > { %v693_v43 = vpop.xlane.xlu0 %692 }
 0x13a   : > { %v717_v7 = vld [vmem:[#allocation2] sm:$0xff] }
 0x13b   : > { %v721_v50 = vmul.f32 0.0009765625, %v717_v7 }
 0x13c   : > { %v498_v25 = vpop.xlane.xlu1 %497 }
 0x13d   : > { %738 = vperm.xlu2 %982, %v721_v50   ;;  %v502_v48 = vadd.f32 %v498_v25, %v399_v14 }
 0x141   : > { %v591_v24 = vpop.xlane.xlu2 %590 }
 0x142   : > { %v599_v15 = vadd.f32 %v591_v24, %v500_v44 }
 0x145   : > { %v690_v28 = vpop.xlane.xlu1 %689 }
 0x146   : > { %v698_v9 = vadd.f32 %v690_v28, %v599_v15 }
 0x148   : > { %v706_v47 = vadd.f32 %v702_v30, %v698_v9 }
 0x14a   : > { %711 = vst.msk [vmem:[#allocation2 + $0x8] sm:$0xff] %vm200_vm0, %v706_v47  ;;  %v594_v40 = vpop.xlane.xlu2 %593 }
 0x14b   : > { %v600_v36 = vadd.f32 %v594_v40, %v501_v42 }
 0x14d   : > { %v699_v34 = vadd.f32 %v693_v43, %v600_v36 }
 0x14f   : > { %v707_v60 = vadd.f32 %v703_v17, %v699_v34  ;;  %v696_v13 = vpop.xlane.xlu1 %695 }
 0x151   : > { %712 = vst.msk [vmem:[#allocation2 + $0x10] sm:$0xff] %vm200_vm0, %v707_v60  ;;  %v718_v61 = vld [vmem:[#allocation2 + $0x8] sm:$0xff] }
 0x152   : > { %v722_v2 = vmul.f32 0.0009765625, %v718_v61 }
 0x154   : > { %v597_v35 = vpop.xlane.xlu2 %596  ;;  %743 = vperm.xlu0 %984, %v722_v2  }
 0x155   : > { %v601_v27 = vadd.f32 %v597_v35, %v502_v48 }
 0x157   : > { %v700_v5 = vadd.f32 %v696_v13, %v601_v27 }
 0x158   : > { %v719_v10 = vld [vmem:[#allocation2 + $0x10] sm:$0xff] }
 0x159   : > { %v708_v55 = vadd.f32 %v704_v54, %v700_v5  ;;  %v723_v20 = vmul.f32 0.0009765625, %v719_v10 }
 0x15b   : > { %713 = vst.msk [vmem:[#allocation2 + $0x18] sm:$0xff] %vm200_vm0, %v708_v55  ;;  %748 = vperm.xlu1 %983, %v723_v20  }
 0x162   : > { %v720_v32 = vld [vmem:[#allocation2 + $0x18] sm:$0xff] }
 0x163   : > { %v724_v12 = vmul.f32 0.0009765625, %v720_v32 }
 0x165   : > { %753 = vperm.xlu0 %984, %v724_v12  }
 0x197   : > { %v739_v16 = vpop.permute.xlu2 %738 }
 0x198   : > { %v756_v58 = vsel %vm732_vm2, %v739_v16, 0.0 }
 0x199   : > { %v761_v23 = vsel %vm760_vm4, %v756_v58, 0.0 }
 0x1c6   : > { %v744_v26 = vpop.permute.xlu0 %743 }
 0x1c7   : > { %v757_v0 = vsel %vm733_vm1, %v744_v26, 0.0 }
 0x1c8   : > { %v762_v39 = vsel %vm760_vm4, %v757_v0, 0.0 }
 0x1c9   : > { %v763_v1 = vadd.f32 %v762_v39, %v761_v23 }
 0x1cd   : > { %v749_v59 = vpop.permute.xlu1 %748 }
 0x1ce   : > { %v758_v56 = vsel %vm734_vm3, %v749_v59, 0.0 }
 0x1cf   : > { %v764_v62 = vsel %vm760_vm4, %v758_v56, 0.0 }
 0x1d0   : > { %v765_v52 = vadd.f32 %v764_v62, %v763_v1 }
 0x1d7   : > { %v754_v21 = vpop.permute.xlu0 %753 }
 0x1d8   : > { %v759_v51 = vsel %vm735_vm5, %v754_v21, 0.0 }
 0x1d9   : > { %v766_v33 = vsel %vm760_vm4, %v759_v51, 0.0 }
 0x1da   : > { %v767_v6 = vadd.f32 %v766_v33, %v765_v52 }
 0x1dc   : > { %v768_v49 = vrot.slane %v767_v6, 4 }
 0x1de   : > { %v769_v37 = vadd.f32 %v768_v49, %v767_v6 }
 0x1e0   : > { %v770_v14 = vrot.slane %v769_v37, 2 }
 0x1e2   : > { %v771_v31 = vadd.f32 %v770_v14, %v769_v37 }
 0x1e4   : > { %v772_v46 = vrot.slane %v771_v31, 1 }
 0x1e6   : > { %v773_v4 = vadd.f32 %v772_v46, %v771_v31 }
 0x1e8   : > { %775 = vst.msk [vmem:[%s185_s30] sm:$0x1] %vm774_vm6, %v773_v4 }
 0x1e9   : > { %1012 = shalt.err (!%p1009_p5)
}
 0x1ea   : > { %877 = dma.vmem_to_hbm [thread:$0]  (%p1130_p4), %s788_s4, 16, %s790_s5, %s777_s6  }
 0x1eb PF: > { %p883_p6 = scmp.ge.s32.totalorder %s1063_s17, 2  ;;  %s801_s19 = sand.u32 1, %s1043_s12  }
 0x1ec   : > { %s802_s21 = scalar_lea.sflag [#allocation4], %s801_s19 }
 0x1ed   : > { %p880_p7 = pnand %p883_p6, %p1137_p8 }
 0x1ef   : > { %p881_p9 = pneg %p880_p7 }
 0x1f1   : > { %1038 = dma.done.wait (%p881_p9), %s802_s21, 16  }
 0x1f2   : > { %1040 = vsyncadd (%p881_p9), %s802_s21, 4294967280  ;;  %s16_s17 = sadd.s32 1, %s1063_s17   ;;  %s1743_s12 = smov %s1047_s13 }
 0x1f3   : > { %p13_p10 = scmp.ge.s32.totalorder %s16_s17, 4   ;;  %s1744_s13 = smov %s1051_s14 }
 0x1f4   : > { %s1745_s14 = smov %s1143_s25  ;;  %s1746_s15 = smov %s1059_s16 }
 0x1f5   : > { %s1747_s16 = smov %s1749_s20  ;;  %15 = sbr.rel (!%p13_p10) target bundleno = 4 (0x4), region = 75 }
 0x1fa   :  { %807 = vsyncpa [#allocation4], 1 }
 0x1fb   :  { %809 = vsyncpa [#allocation4 + $0x1], 1 }

</bundles_post_ra>
